<compile_context>
chip_gen: v7x
topology: tpu7x:2x2x1
jax: 0.10.0
libtpu: 0.0.40
codegen_flags: <defaults>
</compile_context>

<pallas_src>
import jax
import jax.numpy as jnp
from jax.experimental import pallas as pl
from jax.experimental.pallas import tpu as pltpu


# ----------------------------------------------------------------------------
# Kernel: per-token-tile fused MoE MLP with the model_dim reduction folded
# into W2.  Grid = (token_tiles,); all expert weights are VMEM-resident and the
# expert loop is fully unrolled in-kernel.
#
#   xt_ref  : (D, TN)   bf16   tokens on the lane axis
#   w1t_ref : (E, H, D) bf16   W1 transposed per expert
#   b1_ref  : (E, H, 1) f32    fc1 bias as a column
#   w2s_ref : (E, H, 1) f32    sum_D W2[e] as a column
#   cw_ref  : (E, TN)   f32    combine weights, tokens on lanes
#   o_ref   : (1, TN)   f32    per-token sum over model_dim (lane-dense row)
# ----------------------------------------------------------------------------
def moe_fused_kernel(xt_ref, w1t_ref, b1_ref, w2s_ref, cw_ref, o_ref):
    xt = xt_ref[...]                                   # (D, TN) bf16
    num_experts = w1t_ref.shape[0]
    acc = jnp.zeros(o_ref.shape, jnp.float32)          # (1, TN)
    for e in range(num_experts):                       # E is small & static -> unrolled
        h = jnp.dot(w1t_ref[e], xt,
                    preferred_element_type=jnp.float32)          # (H, TN) MXU
        h = jnp.maximum(h + b1_ref[e], 0.0)                       # bias + ReLU, f32 VPU
        ysum = jnp.sum(h * w2s_ref[e], axis=0, keepdims=True)     # (1, TN)  fused W2+sum_D
        acc = acc + cw_ref[e:e + 1, :] * ysum
    o_ref[...] = acc


def moe_token_sums(x_flat, w1, b1, w2, b2, combine_w):
    """Per-token sum over model_dim of the combined expert outputs.

    x_flat: [N, D]; w1: [E, D, H]; b1: [E, H]; w2: [E, H, D]; b2: [E, D];
    combine_w: [N, E]  ->  [N] (float32)
    """
    N, D = x_flat.shape
    E, _, H = w1.shape

    # Token tile: lane axis, multiple of 16 (bf16 packing) when small,
    # 256 when large enough (matches v6e/v7x MXU; harmless on v5e).
    if N >= 256:
        TN = 256
    elif N >= 128:
        TN = 128
    else:
        TN = ((N + 15) // 16) * 16
    n_pad = (-N) % TN
    Npad = N + n_pad

    # Lane-dense token layout: tokens along the last (lane) axis everywhere.
    xt = jnp.transpose(x_flat).astype(jnp.bfloat16)            # [D, N]
    cwt = jnp.transpose(combine_w).astype(jnp.float32)         # [E, N]
    if n_pad:
        xt = jnp.pad(xt, ((0, 0), (0, n_pad)))
        cwt = jnp.pad(cwt, ((0, 0), (0, n_pad)))               # padded tokens get cw == 0

    w1t = jnp.transpose(w1, (0, 2, 1)).astype(jnp.bfloat16)    # [E, H, D]
    b1c = b1.reshape(E, H, 1).astype(jnp.float32)              # [E, H, 1]
    w2s = jnp.sum(w2, axis=-1).reshape(E, H, 1).astype(jnp.float32)  # sum_D W2 -> [E, H, 1]

    out = pl.pallas_call(
        moe_fused_kernel,
        out_shape=jax.ShapeDtypeStruct((1, Npad), jnp.float32),
        grid_spec=pltpu.PrefetchScalarGridSpec(
            num_scalar_prefetch=0,
            grid=(Npad // TN,),
            in_specs=[
                pl.BlockSpec((D, TN), lambda t: (0, t)),        # x tile (tokens on lanes)
                pl.BlockSpec((E, H, D), lambda t: (0, 0, 0)),   # all W1, VMEM-resident
                pl.BlockSpec((E, H, 1), lambda t: (0, 0, 0)),   # all b1 columns, resident
                pl.BlockSpec((E, H, 1), lambda t: (0, 0, 0)),   # all sum_D(W2) columns
                pl.BlockSpec((E, TN), lambda t: (0, t)),        # combine weights, lane-dense
            ],
            out_specs=pl.BlockSpec((1, TN), lambda t: (0, t)),  # lane-dense output row
        ),
        compiler_params=pltpu.CompilerParams(
            dimension_semantics=("parallel",),   # token tiles are independent (megacore)
            # Tiny working set (resident weights + one token tile); 32 MiB fits
            # comfortably on v5e/v6e (128 MiB) and v7x (64 MiB physical).
            vmem_limit_bytes=32 * 1024 * 1024,
        ),
    )(xt, w1t, b1c, w2s, cwt)
    return out[0, :N]


# ----------------------------------------------------------------------------
# Full ExampleModel forward
# ----------------------------------------------------------------------------
def example_model_forward(x, gate_w, w1, b1, w2, b2, top_k):
    B, T, D = x.shape
    E = gate_w.shape[1]
    x_flat = x.reshape(B * T, D)

    # Gating glue (tiny matmul + VPU math, plain JAX): softmax over experts,
    # exact top-k via one-hot of lax.top_k indices (matches torch.topk even on
    # ties), renormalize among the selected experts.
    logits = x_flat @ gate_w                                     # [N, E]
    gates = jax.nn.softmax(logits, axis=-1)
    _, idx = jax.lax.top_k(gates, top_k)                         # [N, k]
    mask = jnp.sum(jax.nn.one_hot(idx, E, dtype=gates.dtype), axis=1)  # [N, E]
    cw = gates * mask
    cw = cw / jnp.maximum(jnp.sum(cw, axis=-1, keepdims=True), 1e-9)   # [N, E]

    # Per-token sum over model_dim; b2's contribution is a per-expert scalar
    # after the sum, so it folds into the wrapper as cw @ sum_D(b2).
    token_sums = moe_token_sums(x_flat, w1, b1, w2, b2, cw)      # [N]
    token_sums = token_sums + cw @ jnp.sum(b2, axis=-1)          # [N]

    s = token_sums.reshape(B, T)
    # log_softmax over the token axis: [B, T] is tiny -> plain JAX.
    return jax.nn.log_softmax(s, axis=1)                         # [B, T]


if __name__ == "__main__":
    # Small shapes consistent with the module's args.
    batch_size = 2
    num_tokens = 8
    model_dim = 32
    hidden_size = 64
    num_experts = 4      # num_local_experts * dist_world_size
    top_value = 2

    key = jax.random.PRNGKey(0)
    kx, kg, k1, kb1, k2, kb2 = jax.random.split(key, 6)

    x = jax.random.normal(kx, (batch_size, num_tokens, model_dim), dtype=jnp.float32)

    # Gate: Linear(model_dim, num_experts, bias=False); experts: fc1/fc2 with bias.
    gate_w = 0.02 * jax.random.normal(kg, (model_dim, num_experts), dtype=jnp.float32)
    w1 = 0.02 * jax.random.normal(k1, (num_experts, model_dim, hidden_size), dtype=jnp.float32)
    b1 = 0.01 * jax.random.normal(kb1, (num_experts, hidden_size), dtype=jnp.float32)
    w2 = 0.02 * jax.random.normal(k2, (num_experts, hidden_size, model_dim), dtype=jnp.float32)
    b2 = 0.01 * jax.random.normal(kb2, (num_experts, model_dim), dtype=jnp.float32)

    out = jax.jit(example_model_forward, static_argnames="top_k")(
        x, gate_w, w1, b1, w2, b2, top_k=top_value)
    jax.block_until_ready(out)

    assert out.shape == (batch_size, num_tokens)
    # log_softmax rows must sum (in prob space) to ~1
    assert jnp.allclose(jnp.sum(jnp.exp(out), axis=1), 1.0, atol=1e-4)

    # Pure-JAX f32 dense-expert reference for a numerical sanity check.
    def ref_forward(x, gate_w, w1, b1, w2, b2, top_k):
        B, T, D = x.shape
        E = gate_w.shape[1]
        xf = x.reshape(B * T, D)
        gates = jax.nn.softmax(xf @ gate_w, axis=-1)
        _, idx = jax.lax.top_k(gates, top_k)
        m = jnp.sum(jax.nn.one_hot(idx, E, dtype=gates.dtype), axis=1)
        cw = gates * m
        cw = cw / jnp.maximum(jnp.sum(cw, axis=-1, keepdims=True), 1e-9)
        h = jnp.maximum(jnp.einsum("nd,edh->neh", xf, w1) + b1[None], 0.0)
        y = jnp.einsum("neh,ehd->ned", h, w2) + b2[None]
        comb = jnp.einsum("ne,ned->nd", cw, y).reshape(B, T, D)
        return jax.nn.log_softmax(jnp.sum(comb, axis=2), axis=1)

    ref = ref_forward(x, gate_w, w1, b1, w2, b2, top_value)
    # bf16 MXU operands (x, W1) are intentional; tolerance is loosened to absorb them.
    assert jnp.max(jnp.abs(out - ref)) < 5e-2, float(jnp.max(jnp.abs(out - ref)))

    print("KERNEL_OK")
</pallas_src>

<mosaic_0001>
module attributes {stable_mosaic.version = 11 : i64} {
  func.func @moe_fused_kernel(%arg0: i32, %arg1: memref<32x16xbf16, #tpu.memory_space<vmem>>, %arg2: memref<4x64x32xbf16, #tpu.memory_space<vmem>>, %arg3: memref<4x64x1xf32, #tpu.memory_space<vmem>>, %arg4: memref<4x64x1xf32, #tpu.memory_space<vmem>>, %arg5: memref<4x16xf32, #tpu.memory_space<vmem>>, %arg6: memref<1x16xf32, #tpu.memory_space<vmem>>) attributes {dimension_semantics = [#tpu.dimension_semantics<parallel>], iteration_bounds = array<i64: 1>, scalar_prefetch = 0 : i64, scratch_operands = 0 : i64, tpu.core_type = #tpu.core_type<tc>, window_params = [{transform_indices = @transform_0, window_bounds = array<i64: 32, 16>}, {pipeline_mode = #tpu.pipeline_mode<synchronous>, transform_indices = @transform_1, window_bounds = array<i64: 4, 64, 32>}, {pipeline_mode = #tpu.pipeline_mode<synchronous>, transform_indices = @transform_2, window_bounds = array<i64: 4, 64, 1>}, {pipeline_mode = #tpu.pipeline_mode<synchronous>, transform_indices = @transform_3, window_bounds = array<i64: 4, 64, 1>}, {transform_indices = @transform_4, window_bounds = array<i64: 4, 16>}, {transform_indices = @transform_5, window_bounds = array<i64: 1, 16>}]} {
    %c0 = arith.constant 0 : index
    %c0_0 = arith.constant 0 : index
    %0 = vector.load %arg1[%c0, %c0_0] : memref<32x16xbf16, #tpu.memory_space<vmem>>, vector<32x16xbf16>
    %cst = arith.constant 0.000000e+00 : f32
    %1 = vector.broadcast %cst : f32 to vector<1x16xf32>
    %c0_1 = arith.constant 0 : index
    %c0_2 = arith.constant 0 : index
    %c0_3 = arith.constant 0 : index
    %2 = vector.load %arg2[%c0_1, %c0_2, %c0_3] : memref<4x64x32xbf16, #tpu.memory_space<vmem>>, vector<1x64x32xbf16>
    %3 = vector.shape_cast %2 : vector<1x64x32xbf16> to vector<64x32xbf16>
    %cst_4 = arith.constant dense<0.000000e+00> : vector<64x16xf32>
    %4 = tpu.matmul %3, %0, %cst_4 {dimension_numbers = #tpu.dot_dimension_numbers<[1], [0], [0], [1], [0, 0, 1, 1], [], []>} : vector<64x32xbf16>, vector<32x16xbf16>, vector<64x16xf32> -> vector<64x16xf32>
    %c0_5 = arith.constant 0 : index
    %c0_6 = arith.constant 0 : index
    %c0_7 = arith.constant 0 : index
    %5 = vector.load %arg3[%c0_5, %c0_6, %c0_7] : memref<4x64x1xf32, #tpu.memory_space<vmem>>, vector<1x64x1xf32>
    %6 = vector.shape_cast %5 : vector<1x64x1xf32> to vector<64x1xf32>
    %7 = vector.broadcast %6 : vector<64x1xf32> to vector<64x16xf32>
    %8 = arith.addf %4, %7 : vector<64x16xf32>
    %cst_8 = arith.constant 0.000000e+00 : f32
    %9 = vector.broadcast %cst_8 : f32 to vector<64x16xf32>
    %10 = arith.maximumf %8, %9 : vector<64x16xf32>
    %c0_9 = arith.constant 0 : index
    %c0_10 = arith.constant 0 : index
    %c0_11 = arith.constant 0 : index
    %11 = vector.load %arg4[%c0_9, %c0_10, %c0_11] : memref<4x64x1xf32, #tpu.memory_space<vmem>>, vector<1x64x1xf32>
    %12 = vector.shape_cast %11 : vector<1x64x1xf32> to vector<64x1xf32>
    %13 = vector.broadcast %12 : vector<64x1xf32> to vector<64x16xf32>
    %14 = arith.mulf %10, %13 : vector<64x16xf32>
    %cst_12 = arith.constant dense<0.000000e+00> : vector<16xf32>
    %15 = vector.multi_reduction <add>, %14, %cst_12 [0] : vector<64x16xf32> to vector<16xf32>
    %16 = vector.shape_cast %15 : vector<16xf32> to vector<1x16xf32>
    %c0_13 = arith.constant 0 : index
    %c0_14 = arith.constant 0 : index
    %17 = vector.load %arg5[%c0_13, %c0_14] : memref<4x16xf32, #tpu.memory_space<vmem>>, vector<1x16xf32>
    %18 = arith.mulf %17, %16 : vector<1x16xf32>
    %19 = arith.addf %1, %18 : vector<1x16xf32>
    %c1 = arith.constant 1 : index
    %c0_15 = arith.constant 0 : index
    %c0_16 = arith.constant 0 : index
    %20 = vector.load %arg2[%c1, %c0_15, %c0_16] : memref<4x64x32xbf16, #tpu.memory_space<vmem>>, vector<1x64x32xbf16>
    %21 = vector.shape_cast %20 : vector<1x64x32xbf16> to vector<64x32xbf16>
    %cst_17 = arith.constant dense<0.000000e+00> : vector<64x16xf32>
    %22 = tpu.matmul %21, %0, %cst_17 {dimension_numbers = #tpu.dot_dimension_numbers<[1], [0], [0], [1], [0, 0, 1, 1], [], []>} : vector<64x32xbf16>, vector<32x16xbf16>, vector<64x16xf32> -> vector<64x16xf32>
    %c1_18 = arith.constant 1 : index
    %c0_19 = arith.constant 0 : index
    %c0_20 = arith.constant 0 : index
    %23 = vector.load %arg3[%c1_18, %c0_19, %c0_20] : memref<4x64x1xf32, #tpu.memory_space<vmem>>, vector<1x64x1xf32>
    %24 = vector.shape_cast %23 : vector<1x64x1xf32> to vector<64x1xf32>
    %25 = vector.broadcast %24 : vector<64x1xf32> to vector<64x16xf32>
    %26 = arith.addf %22, %25 : vector<64x16xf32>
    %cst_21 = arith.constant 0.000000e+00 : f32
    %27 = vector.broadcast %cst_21 : f32 to vector<64x16xf32>
    %28 = arith.maximumf %26, %27 : vector<64x16xf32>
    %c1_22 = arith.constant 1 : index
    %c0_23 = arith.constant 0 : index
    %c0_24 = arith.constant 0 : index
    %29 = vector.load %arg4[%c1_22, %c0_23, %c0_24] : memref<4x64x1xf32, #tpu.memory_space<vmem>>, vector<1x64x1xf32>
    %30 = vector.shape_cast %29 : vector<1x64x1xf32> to vector<64x1xf32>
    %31 = vector.broadcast %30 : vector<64x1xf32> to vector<64x16xf32>
    %32 = arith.mulf %28, %31 : vector<64x16xf32>
    %cst_25 = arith.constant dense<0.000000e+00> : vector<16xf32>
    %33 = vector.multi_reduction <add>, %32, %cst_25 [0] : vector<64x16xf32> to vector<16xf32>
    %34 = vector.shape_cast %33 : vector<16xf32> to vector<1x16xf32>
    %c1_26 = arith.constant 1 : index
    %c0_27 = arith.constant 0 : index
    %35 = vector.load %arg5[%c1_26, %c0_27] : memref<4x16xf32, #tpu.memory_space<vmem>>, vector<1x16xf32>
    %36 = arith.mulf %35, %34 : vector<1x16xf32>
    %37 = arith.addf %19, %36 : vector<1x16xf32>
    %c2 = arith.constant 2 : index
    %c0_28 = arith.constant 0 : index
    %c0_29 = arith.constant 0 : index
    %38 = vector.load %arg2[%c2, %c0_28, %c0_29] : memref<4x64x32xbf16, #tpu.memory_space<vmem>>, vector<1x64x32xbf16>
    %39 = vector.shape_cast %38 : vector<1x64x32xbf16> to vector<64x32xbf16>
    %cst_30 = arith.constant dense<0.000000e+00> : vector<64x16xf32>
    %40 = tpu.matmul %39, %0, %cst_30 {dimension_numbers = #tpu.dot_dimension_numbers<[1], [0], [0], [1], [0, 0, 1, 1], [], []>} : vector<64x32xbf16>, vector<32x16xbf16>, vector<64x16xf32> -> vector<64x16xf32>
    %c2_31 = arith.constant 2 : index
    %c0_32 = arith.constant 0 : index
    %c0_33 = arith.constant 0 : index
    %41 = vector.load %arg3[%c2_31, %c0_32, %c0_33] : memref<4x64x1xf32, #tpu.memory_space<vmem>>, vector<1x64x1xf32>
    %42 = vector.shape_cast %41 : vector<1x64x1xf32> to vector<64x1xf32>
    %43 = vector.broadcast %42 : vector<64x1xf32> to vector<64x16xf32>
    %44 = arith.addf %40, %43 : vector<64x16xf32>
    %cst_34 = arith.constant 0.000000e+00 : f32
    %45 = vector.broadcast %cst_34 : f32 to vector<64x16xf32>
    %46 = arith.maximumf %44, %45 : vector<64x16xf32>
    %c2_35 = arith.constant 2 : index
    %c0_36 = arith.constant 0 : index
    %c0_37 = arith.constant 0 : index
    %47 = vector.load %arg4[%c2_35, %c0_36, %c0_37] : memref<4x64x1xf32, #tpu.memory_space<vmem>>, vector<1x64x1xf32>
    %48 = vector.shape_cast %47 : vector<1x64x1xf32> to vector<64x1xf32>
    %49 = vector.broadcast %48 : vector<64x1xf32> to vector<64x16xf32>
    %50 = arith.mulf %46, %49 : vector<64x16xf32>
    %cst_38 = arith.constant dense<0.000000e+00> : vector<16xf32>
    %51 = vector.multi_reduction <add>, %50, %cst_38 [0] : vector<64x16xf32> to vector<16xf32>
    %52 = vector.shape_cast %51 : vector<16xf32> to vector<1x16xf32>
    %c2_39 = arith.constant 2 : index
    %c0_40 = arith.constant 0 : index
    %53 = vector.load %arg5[%c2_39, %c0_40] : memref<4x16xf32, #tpu.memory_space<vmem>>, vector<1x16xf32>
    %54 = arith.mulf %53, %52 : vector<1x16xf32>
    %55 = arith.addf %37, %54 : vector<1x16xf32>
    %c3 = arith.constant 3 : index
    %c0_41 = arith.constant 0 : index
    %c0_42 = arith.constant 0 : index
    %56 = vector.load %arg2[%c3, %c0_41, %c0_42] : memref<4x64x32xbf16, #tpu.memory_space<vmem>>, vector<1x64x32xbf16>
    %57 = vector.shape_cast %56 : vector<1x64x32xbf16> to vector<64x32xbf16>
    %cst_43 = arith.constant dense<0.000000e+00> : vector<64x16xf32>
    %58 = tpu.matmul %57, %0, %cst_43 {dimension_numbers = #tpu.dot_dimension_numbers<[1], [0], [0], [1], [0, 0, 1, 1], [], []>} : vector<64x32xbf16>, vector<32x16xbf16>, vector<64x16xf32> -> vector<64x16xf32>
    %c3_44 = arith.constant 3 : index
    %c0_45 = arith.constant 0 : index
    %c0_46 = arith.constant 0 : index
    %59 = vector.load %arg3[%c3_44, %c0_45, %c0_46] : memref<4x64x1xf32, #tpu.memory_space<vmem>>, vector<1x64x1xf32>
    %60 = vector.shape_cast %59 : vector<1x64x1xf32> to vector<64x1xf32>
    %61 = vector.broadcast %60 : vector<64x1xf32> to vector<64x16xf32>
    %62 = arith.addf %58, %61 : vector<64x16xf32>
    %cst_47 = arith.constant 0.000000e+00 : f32
    %63 = vector.broadcast %cst_47 : f32 to vector<64x16xf32>
    %64 = arith.maximumf %62, %63 : vector<64x16xf32>
    %c3_48 = arith.constant 3 : index
    %c0_49 = arith.constant 0 : index
    %c0_50 = arith.constant 0 : index
    %65 = vector.load %arg4[%c3_48, %c0_49, %c0_50] : memref<4x64x1xf32, #tpu.memory_space<vmem>>, vector<1x64x1xf32>
    %66 = vector.shape_cast %65 : vector<1x64x1xf32> to vector<64x1xf32>
    %67 = vector.broadcast %66 : vector<64x1xf32> to vector<64x16xf32>
    %68 = arith.mulf %64, %67 : vector<64x16xf32>
    %cst_51 = arith.constant dense<0.000000e+00> : vector<16xf32>
    %69 = vector.multi_reduction <add>, %68, %cst_51 [0] : vector<64x16xf32> to vector<16xf32>
    %70 = vector.shape_cast %69 : vector<16xf32> to vector<1x16xf32>
    %c3_52 = arith.constant 3 : index
    %c0_53 = arith.constant 0 : index
    %71 = vector.load %arg5[%c3_52, %c0_53] : memref<4x16xf32, #tpu.memory_space<vmem>>, vector<1x16xf32>
    %72 = arith.mulf %71, %70 : vector<1x16xf32>
    %73 = arith.addf %55, %72 : vector<1x16xf32>
    %c0_54 = arith.constant 0 : index
    %c0_55 = arith.constant 0 : index
    %74 = vector.load %arg6[%c0_54, %c0_55] : memref<1x16xf32, #tpu.memory_space<vmem>>, vector<1x16xf32>
    tpu.vector_store %arg6[%c0_54, %c0_55], %73 {strides = array<i32>} : memref<1x16xf32, #tpu.memory_space<vmem>>, vector<1x16xf32>,
    return
  }
  func.func @transform_0(%arg0: i32) -> (i32, i32) {
    %c0_i32 = arith.constant 0 : i32
    %c0_i32_0 = arith.constant 0 : i32
    return %c0_i32, %arg0 : i32, i32
  }
  func.func @transform_1(%arg0: i32) -> (i32, i32, i32) {
    %c0_i32 = arith.constant 0 : i32
    %c0_i32_0 = arith.constant 0 : i32
    %c0_i32_1 = arith.constant 0 : i32
    %c0_i32_2 = arith.constant 0 : i32
    return %c0_i32, %c0_i32_0, %c0_i32_1 : i32, i32, i32
  }
  func.func @transform_2(%arg0: i32) -> (i32, i32, i32) {
    %c0_i32 = arith.constant 0 : i32
    %c0_i32_0 = arith.constant 0 : i32
    %c0_i32_1 = arith.constant 0 : i32
    %c0_i32_2 = arith.constant 0 : i32
    return %c0_i32, %c0_i32_0, %c0_i32_1 : i32, i32, i32
  }
  func.func @transform_3(%arg0: i32) -> (i32, i32, i32) {
    %c0_i32 = arith.constant 0 : i32
    %c0_i32_0 = arith.constant 0 : i32
    %c0_i32_1 = arith.constant 0 : i32
    %c0_i32_2 = arith.constant 0 : i32
    return %c0_i32, %c0_i32_0, %c0_i32_1 : i32, i32, i32
  }
  func.func @transform_4(%arg0: i32) -> (i32, i32) {
    %c0_i32 = arith.constant 0 : i32
    %c0_i32_0 = arith.constant 0 : i32
    return %c0_i32, %arg0 : i32, i32
  }
  func.func @transform_5(%arg0: i32) -> (i32, i32) {
    %c0_i32 = arith.constant 0 : i32
    %c0_i32_0 = arith.constant 0 : i32
    return %c0_i32, %arg0 : i32, i32
  }
}

</mosaic_0001>

<bundles_post_ra>
// kernel: example_model_forward.1
= control target key start
LH: loop header
LB: loop body
LE: loop exit
PB: predicated region body
PF: predicated region fallthrough
CT: control target
= control target key end

     0   :  { %v1217_v0 = vmov 0   ;;  %vm113_vm0 = vcmask 261120   ;;  %vm255_vm1 = vcmask 130048   ;;  %vm1012_vm2 = vcmask 122880   ;;  %s1701_s2 = inlined_call_operand.vmem [shape: f32[4,64,1], index: 2, kind: input, shape index: {}]   ;;  %s1702_s0 = inlined_call_operand.vmem [shape: bf16[32,16], index: 0, kind: input, shape index: {}]   ;;  %s1703_s1 = inlined_call_operand.vmem [shape: bf16[4,64,32], index: 1, kind: input, shape index: {}]   ;;  %s1704_s3 = inlined_call_operand.vmem [shape: f32[4,64,1], index: 3, kind: input, shape index: {}]   ;;  %s1705_s4 = inlined_call_operand.vmem [shape: f32[4,16], index: 4, kind: input, shape index: {}]   ;;  %s1706_s5 = inlined_call_operand.vmem [shape: f32[1,16], index: 5, kind: output, shape index: {}]  }
   0x1   :  { %1198 = vset.pattern.permute.xlu1 %v1217_v0  ;;  %1197 = vset.pattern.permute.xlu0 %v1217_v0  ;;  %v35_v1 = vld [vmem:[%s1701_s2 + $0x10] sm:$0xff]  ;;  %v33_v2 = vld [vmem:[%s1701_s2] sm:$0xff]  ;;  %v36_v4 = vld [vmem:[%s1701_s2 + $0x18] sm:$0xff] }
   0x2   :  { %53 = vperm.xlu1 %1198, %v35_v1   ;;  %43 = vperm.xlu0 %1197, %v33_v2   ;;  %v1199_v3 = vld [vmem:[%s1702_s0] sm:$0xff]   ;;  %v34_v5 = vld [vmem:[%s1701_s2 + $0x8] sm:$0xff]  ;;  %v40_v13 = vld [vmem:[%s1701_s2 + $0x38] sm:$0xff] }
   0x3   :  { %1148 = vmatprep.subr.bf16.mxu0 %v1199_v3  ;;  %1160 = vmatprep.subr.bf16.mxu1 %v1199_v3  ;;  %v1200_v6 = vld [vmem:[%s1702_s0 + $0x8] sm:$0xff]   ;;  %v37_v8 = vld [vmem:[%s1701_s2 + $0x20] sm:$0xff]  ;;  %v39_v14 = vld [vmem:[%s1701_s2 + $0x30] sm:$0xff] }
   0x4   :  { %1149 = vmatpush3.bf16.msra.mxu0 %v1199_v3  ;;  %1161 = vmatpush3.bf16.msra.mxu1 %v1199_v3  ;;  %v38_v7 = vld [vmem:[%s1701_s2 + $0x28] sm:$0xff]  ;;  %v1201_v9 = vld [vmem:[%s1703_s1] sm:$0xff]   ;;  %v1205_v15 = vld [vmem:[%s1703_s1 + $0x10] sm:$0xff]  }
   0x5   :  { %v1202_v10 = vld [vmem:[%s1703_s1 + $0x20] sm:$0xff]   ;;  %1150 = vmatprep.subr.bf16.mxu0 %v1200_v6  ;;  %1162 = vmatprep.subr.bf16.mxu1 %v1200_v6  ;;  %v1203_v11 = vld [vmem:[%s1703_s1 + $0x8] sm:$0xff]   ;;  %v1206_v16 = vld [vmem:[%s1703_s1 + $0x30] sm:$0xff]  }
   0x6   :  { %58 = vperm.xlu1 %1198, %v36_v4   ;;  %48 = vperm.xlu0 %1197, %v34_v5   ;;  %v1204_v12 = vld [vmem:[%s1703_s1 + $0x28] sm:$0xff]   ;;  %v199_v18 = vld [vmem:[%s1704_s3] sm:$0xff]  ;;  %v1207_v19 = vld [vmem:[%s1703_s1 + $0x18] sm:$0xff]  }
   0x7   :  { %1152 = vmatprep.mubr.msk.bf16.mxu0 %vm113_vm0, %v1201_v9  ;;  %1164 = vmatprep.mubr.msk.bf16.mxu1 %vm113_vm0, %v1202_v10  ;;  %v200_v17 = vld [vmem:[%s1704_s3 + $0x8] sm:$0xff]  ;;  %v1208_v20 = vld [vmem:[%s1703_s1 + $0x38] sm:$0xff]   ;;  %v1209_v21 = vld [vmem:[%s1703_s1 + $0x40] sm:$0xff]  }
   0x8   :  { %1151 = vmatpush3.bf16.msra.mxu0 %v1200_v6  ;;  %1163 = vmatpush3.bf16.msra.mxu1 %v1200_v6  ;;  %v1210_v22 = vld [vmem:[%s1703_s1 + $0x60] sm:$0xff]   ;;  %v202_v23 = vld [vmem:[%s1704_s3 + $0x18] sm:$0xff]  ;;  %v201_v24 = vld [vmem:[%s1704_s3 + $0x10] sm:$0xff] }
   0x9   :  { %1172 = vmatprep.subr.bf16.mxu0 %v1199_v3  ;;  %1184 = vmatprep.subr.bf16.mxu1 %v1199_v3  ;;  %v204_v25 = vld [vmem:[%s1704_s3 + $0x28] sm:$0xff]  ;;  %v203_v26 = vld [vmem:[%s1704_s3 + $0x20] sm:$0xff]  ;;  %v1213_v29 = vld [vmem:[%s1703_s1 + $0x50] sm:$0xff]  }
   0xa   :  { %68 = vperm.xlu1 %1198, %v38_v7   ;;  %63 = vperm.xlu0 %1197, %v37_v8   ;;  %v1211_v27 = vld [vmem:[%s1703_s1 + $0x48] sm:$0xff]   ;;  %v1214_v30 = vld [vmem:[%s1703_s1 + $0x70] sm:$0xff]   ;;  %v206_v31 = vld [vmem:[%s1704_s3 + $0x38] sm:$0xff] }
   0xb   :  { %1153 = vmatmul.mubr.msk.bf16.vlgmr.msra.gmra.mrb[0].mxu0 %vm113_vm0, %v1203_v11  ;;  %1165 = vmatmul.mubr.msk.bf16.vlgmr.msra.gmra.mrb[0].mxu1 %vm113_vm0, %v1204_v12  ;;  %v1212_v28 = vld [vmem:[%s1703_s1 + $0x68] sm:$0xff]   ;;  %v205_v32 = vld [vmem:[%s1704_s3 + $0x30] sm:$0xff]  ;;  %v1036_v34 = vld [vmem:[%s1701_s2 + $0x40] sm:$0xff] }
   0xc   :  { %1173 = vmatpush3.bf16.msra.mxu0 %v1199_v3  ;;  %1185 = vmatpush3.bf16.msra.mxu1 %v1199_v3  ;;  %v1037_v33 = vld [vmem:[%s1701_s2 + $0x48] sm:$0xff]  ;;  %v1215_v35 = vld [vmem:[%s1703_s1 + $0x58] sm:$0xff]   ;;  %v1038_v38 = vld [vmem:[%s1701_s2 + $0x50] sm:$0xff] }
   0xd   :  { %1156 = vmatprep.mubr.msk.bf16.mxu0 %vm113_vm0, %v1205_v15  ;;  %1168 = vmatprep.mubr.msk.bf16.mxu1 %vm113_vm0, %v1206_v16  ;;  %v1216_v36 = vld [vmem:[%s1703_s1 + $0x78] sm:$0xff]   ;;  %v1041_v39 = vld [vmem:[%s1701_s2 + $0x68] sm:$0xff]  ;;  %v1040_v40 = vld [vmem:[%s1701_s2 + $0x60] sm:$0xff] }
   0xe   :  { %78 = vperm.xlu1 %1198, %v40_v13   ;;  %73 = vperm.xlu0 %1197, %v39_v14   ;;  %v1039_v37 = vld [vmem:[%s1701_s2 + $0x58] sm:$0xff]  ;;  %v1042_v42 = vld [vmem:[%s1701_s2 + $0x70] sm:$0xff]  ;;  %v1053_v43 = vld [vmem:[%s1704_s3 + $0x48] sm:$0xff] }
   0xf   :  { %1174 = vmatprep.subr.bf16.mxu0 %v1200_v6  ;;  %1186 = vmatprep.subr.bf16.mxu1 %v1200_v6  ;;  %v1043_v41 = vld [vmem:[%s1701_s2 + $0x78] sm:$0xff]  ;;  %v1052_v44 = vld [vmem:[%s1704_s3 + $0x40] sm:$0xff]  ;;  %v1054_v46 = vld [vmem:[%s1704_s3 + $0x50] sm:$0xff] }
  0x10   :  { %1175 = vmatpush3.bf16.msra.mxu0 %v1200_v6  ;;  %1187 = vmatpush3.bf16.msra.mxu1 %v1200_v6  ;;  %v1055_v45 = vld [vmem:[%s1704_s3 + $0x58] sm:$0xff]  ;;  %v1057_v47 = vld [vmem:[%s1704_s3 + $0x68] sm:$0xff]  ;;  %v1056_v48 = vld [vmem:[%s1704_s3 + $0x60] sm:$0xff] }
  0x11   :  { %v1059_v49 = vld [vmem:[%s1704_s3 + $0x78] sm:$0xff]  ;;  %v1058_v50 = vld [vmem:[%s1704_s3 + $0x70] sm:$0xff]  ;;  %v1069_v51 = vld [vmem:[%s1701_s2 + $0x88] sm:$0xff] }
  0x12   :  { %214 = vperm.xlu1 %1198, %v200_v17   ;;  %209 = vperm.xlu0 %1197, %v199_v18   ;;  %v1068_v52 = vld [vmem:[%s1701_s2 + $0x80] sm:$0xff]  ;;  %v1071_v53 = vld [vmem:[%s1701_s2 + $0x98] sm:$0xff]  ;;  %v1070_v54 = vld [vmem:[%s1701_s2 + $0x90] sm:$0xff] }
  0x13   :  { %1157 = vmatmul.mubr.msk.bf16.gmra.mrb[4].mxu0 %vm113_vm0, %v1207_v19  ;;  %1169 = vmatmul.mubr.msk.bf16.gmra.mrb[4].mxu1 %vm113_vm0, %v1208_v20  ;;  %v1073_v55 = vld [vmem:[%s1701_s2 + $0xa8] sm:$0xff]  ;;  %v1072_v56 = vld [vmem:[%s1701_s2 + $0xa0] sm:$0xff]  ;;  %v1074_v58 = vld [vmem:[%s1701_s2 + $0xb0] sm:$0xff] }
  0x14   :  { %1176 = vmatprep.mubr.msk.bf16.mxu0 %vm113_vm0, %v1209_v21  ;;  %1188 = vmatprep.mubr.msk.bf16.mxu1 %vm113_vm0, %v1210_v22  ;;  %v1100_v57 = vld [vmem:[%s1701_s2 + $0xc0] sm:$0xff]  ;;  %v1101_v60 = vld [vmem:[%s1701_s2 + $0xc8] sm:$0xff]  ;;  %v1102_v61 = vld [vmem:[%s1701_s2 + $0xd0] sm:$0xff] }
  0x15   :  { %v1084_v59 = vld [vmem:[%s1704_s3 + $0x80] sm:$0xff]  ;;  %v1085_v62 = vld [vmem:[%s1704_s3 + $0x88] sm:$0xff]  ;;  %v1103_v63 = vld [vmem:[%s1701_s2 + $0xd8] sm:$0xff] }
  0x16   :  { %224 = vperm.xlu1 %1198, %v202_v23   ;;  %219 = vperm.xlu0 %1197, %v201_v24   ;;  %v1086_v0 = vld [vmem:[%s1704_s3 + $0x90] sm:$0xff]  ;;  %v1117_v1 = vld [vmem:[%s1704_s3 + $0xc8] sm:$0xff]  ;;  %v1116_v2 = vld [vmem:[%s1704_s3 + $0xc0] sm:$0xff] }
  0x17   :  { %v1104_v3 = vld [vmem:[%s1701_s2 + $0xe0] sm:$0xff]  ;;  %v1087_v4 = vld [vmem:[%s1704_s3 + $0x98] sm:$0xff]  ;;  %v1118_v6 = vld [vmem:[%s1704_s3 + $0xd0] sm:$0xff] }
  0x18   :  { %v1088_v5 = vld [vmem:[%s1704_s3 + $0xa0] sm:$0xff]  ;;  %v1119_v7 = vld [vmem:[%s1704_s3 + $0xd8] sm:$0xff]  ;;  %v1105_v8 = vld [vmem:[%s1701_s2 + $0xe8] sm:$0xff] }
  0x19   :  { %v1089_v9 = vld [vmem:[%s1704_s3 + $0xa8] sm:$0xff]  ;;  %v1075_v10 = vld [vmem:[%s1701_s2 + $0xb8] sm:$0xff]  ;;  %v1120_v11 = vld [vmem:[%s1704_s3 + $0xe0] sm:$0xff] }
  0x1a   :  { %234 = vperm.xlu1 %1198, %v204_v25   ;;  %229 = vperm.xlu0 %1197, %v203_v26   ;;  %v1106_v12 = vld [vmem:[%s1701_s2 + $0xf0] sm:$0xff]  ;;  %v1107_v13 = vld [vmem:[%s1701_s2 + $0xf8] sm:$0xff]  ;;  %v1121_v16 = vld [vmem:[%s1704_s3 + $0xe8] sm:$0xff] }
  0x1b   :  { %1177 = vmatmul.mubr.msk.bf16.vlgmr.msra.gmra.mrb[8].mxu0 %vm113_vm0, %v1211_v27  ;;  %1189 = vmatmul.mubr.msk.bf16.vlgmr.msra.gmra.mrb[8].mxu1 %vm113_vm0, %v1212_v28  ;;  %v1090_v14 = vld [vmem:[%s1704_s3 + $0xb0] sm:$0xff]  ;;  %v1091_v15 = vld [vmem:[%s1704_s3 + $0xb8] sm:$0xff] }
  0x1c   :  { %1180 = vmatprep.mubr.msk.bf16.mxu0 %vm113_vm0, %v1213_v29  ;;  %1192 = vmatprep.mubr.msk.bf16.mxu1 %vm113_vm0, %v1214_v30  ;;  %v1123_v17 = vld [vmem:[%s1704_s3 + $0xf8] sm:$0xff]  ;;  %v1122_v18 = vld [vmem:[%s1704_s3 + $0xf0] sm:$0xff] }
  0x1e   :  { %244 = vperm.xlu1 %1198, %v206_v31   ;;  %239 = vperm.xlu0 %1197, %v205_v32  }
  0x22   :  { %305 = vperm.xlu1 %1198, %v1037_v33   ;;  %300 = vperm.xlu0 %1197, %v1036_v34  }
  0x23   :  { %1181 = vmatmul.mubr.msk.bf16.gmra.mrb[12].mxu0 %vm113_vm0, %v1215_v35  ;;  %1193 = vmatmul.mubr.msk.bf16.gmra.mrb[12].mxu1 %vm113_vm0, %v1216_v36 }
  0x26   :  { %315 = vperm.xlu1 %1198, %v1039_v37   ;;  %310 = vperm.xlu0 %1197, %v1038_v38  }
  0x2a   :  { %325 = vperm.xlu1 %1198, %v1041_v39   ;;  %320 = vperm.xlu0 %1197, %v1040_v40  }
  0x2e   :  { %335 = vperm.xlu1 %1198, %v1043_v41   ;;  %330 = vperm.xlu0 %1197, %v1042_v42  }
  0x32   :  { %459 = vperm.xlu1 %1198, %v1053_v43   ;;  %454 = vperm.xlu0 %1197, %v1052_v44  }
  0x36   :  { %469 = vperm.xlu1 %1198, %v1055_v45   ;;  %464 = vperm.xlu0 %1197, %v1054_v46  }
  0x3a   :  { %479 = vperm.xlu1 %1198, %v1057_v47   ;;  %474 = vperm.xlu0 %1197, %v1056_v48  }
  0x3e   :  { %489 = vperm.xlu1 %1198, %v1059_v49   ;;  %484 = vperm.xlu0 %1197, %v1058_v50  }
  0x42   :  { %549 = vperm.xlu1 %1198, %v1069_v51   ;;  %544 = vperm.xlu0 %1197, %v1068_v52  }
  0x46   :  { %559 = vperm.xlu1 %1198, %v1071_v53   ;;  %554 = vperm.xlu0 %1197, %v1070_v54  }
  0x4a   :  { %569 = vperm.xlu1 %1198, %v1073_v55   ;;  %564 = vperm.xlu0 %1197, %v1072_v56  }
  0x4e   :  { %788 = vperm.xlu1 %1198, %v1100_v57   ;;  %574 = vperm.xlu0 %1197, %v1074_v58  }
  0x52   :  { %698 = vperm.xlu1 %1198, %v1084_v59   ;;  %793 = vperm.xlu0 %1197, %v1101_v60  }
  0x56   :  { %798 = vperm.xlu1 %1198, %v1102_v61   ;;  %703 = vperm.xlu0 %1197, %v1085_v62  }
  0x5a   :  { %803 = vperm.xlu1 %1198, %v1103_v63   ;;  %708 = vperm.xlu0 %1197, %v1086_v0  }
  0x5e   :  { %947 = vperm.xlu1 %1198, %v1117_v1   ;;  %942 = vperm.xlu0 %1197, %v1116_v2  }
  0x62   :  { %808 = vperm.xlu1 %1198, %v1104_v3   ;;  %713 = vperm.xlu0 %1197, %v1087_v4  }
  0x66   :  { %718 = vperm.xlu1 %1198, %v1088_v5   ;;  %952 = vperm.xlu0 %1197, %v1118_v6  }
  0x6a   :  { %957 = vperm.xlu1 %1198, %v1119_v7   ;;  %813 = vperm.xlu0 %1197, %v1105_v8  }
  0x6e   :  { %723 = vperm.xlu1 %1198, %v1089_v9   ;;  %579 = vperm.xlu0 %1197, %v1075_v10  }
  0x72   :  { %962 = vperm.xlu1 %1198, %v1120_v11   ;;  %818 = vperm.xlu0 %1197, %v1106_v12  }
  0x76   :  { %823 = vperm.xlu1 %1198, %v1107_v13   ;;  %728 = vperm.xlu0 %1197, %v1090_v14  }
  0x7a   :  { %733 = vperm.xlu1 %1198, %v1091_v15   ;;  %967 = vperm.xlu0 %1197, %v1121_v16  }
  0x7e   :  { %977 = vperm.xlu1 %1198, %v1123_v17   ;;  %972 = vperm.xlu0 %1197, %v1122_v18  }
  0x81   :  { %v54_v19 = vpop.permute.xlu1 %53  ;;  %v44_v20 = vpop.permute.xlu0 %43 }
  0x85   :  { %v1510_v21 = vpop.permute.xlu1 %58  ;;  %v1512_v22 = vpop.permute.xlu0 %48 }
  0x89   :  { %v1514_v23 = vpop.permute.xlu1 %68  ;;  %v1516_v24 = vpop.permute.xlu0 %63 }
  0x8d   :  { %v1518_v25 = vpop.permute.xlu1 %78  ;;  %v1520_v26 = vpop.permute.xlu0 %73 }
  0x91   :  { %v1522_v27 = vpop.permute.xlu1 %214  ;;  %v1524_v28 = vpop.permute.xlu0 %209 }
  0x95   :  { %v1526_v29 = vpop.permute.xlu1 %224  ;;  %v220_v30 = vpop.permute.xlu0 %219 }
  0x99   :  { %v1528_v31 = vpop.permute.xlu1 %234  ;;  %v1530_v32 = vpop.permute.xlu0 %229 }
  0x9d   :  { %v1532_v33 = vpop.permute.xlu1 %244  ;;  %v1534_v34 = vpop.permute.xlu0 %239 }
  0xa1   :  { %v306_v35 = vpop.permute.xlu1 %305  ;;  %v301_v36 = vpop.permute.xlu0 %300 }
  0xa5   :  { %v316_v37 = vpop.permute.xlu1 %315  ;;  %v311_v38 = vpop.permute.xlu0 %310 }
  0xa9   :  { %v1536_v39 = vpop.permute.xlu1 %325  ;;  %v1538_v40 = vpop.permute.xlu0 %320 }
  0xad   :  { %v1540_v41 = vpop.permute.xlu1 %335  ;;  %v1542_v42 = vpop.permute.xlu0 %330 }
  0xb1   :  { %v460_v43 = vpop.permute.xlu1 %459  ;;  %v455_v44 = vpop.permute.xlu0 %454 }
  0xb5   :  { %v1544_v45 = vpop.permute.xlu1 %469  ;;  %v465_v46 = vpop.permute.xlu0 %464 }
  0xb9   :  { %v1546_v47 = vpop.permute.xlu1 %479  ;;  %v1548_v48 = vpop.permute.xlu0 %474 }
  0xbd   :  { %v1550_v49 = vpop.permute.xlu1 %489  ;;  %v1552_v50 = vpop.permute.xlu0 %484 }
  0xc1   :  { %v1554_v51 = vpop.permute.xlu1 %549  ;;  %v1556_v52 = vpop.permute.xlu0 %544 }
  0xc5   :  { %v1558_v53 = vpop.permute.xlu1 %559  ;;  %v1560_v54 = vpop.permute.xlu0 %554 }
  0xc9   :  { %v1562_v55 = vpop.permute.xlu1 %569  ;;  %v1564_v56 = vpop.permute.xlu0 %564 }
  0xca   :  { %1707 = vst [vmem:[#allocation2_spill] sm:$0xff] %v1562_v55 }
  0xcd   :  { %v1566_v57 = vpop.permute.xlu1 %788  ;;  %v1568_v58 = vpop.permute.xlu0 %574 }
  0xce   :  { %1708 = vst [vmem:[#allocation3_spill] sm:$0xff] %v1568_v58 }
  0xd1   :  { %v1570_v59 = vpop.permute.xlu1 %698  ;;  %v1572_v60 = vpop.permute.xlu0 %793 }
  0xd5   :  { %v1574_v61 = vpop.permute.xlu1 %798  ;;  %v1576_v62 = vpop.permute.xlu0 %703 }
  0xd6   :  { %1709 = vst [vmem:[#allocation4_spill] sm:$0xff] %v1576_v62 }
  0xd9   :  { %v1578_v63 = vpop.permute.xlu1 %803  ;;  %v1580_v0 = vpop.permute.xlu0 %708 }
  0xdd   :  { %v1582_v1 = vpop.permute.xlu1 %947  ;;  %v1584_v2 = vpop.permute.xlu0 %942 }
  0xde   :  { %1710 = vst [vmem:[#allocation5_spill] sm:$0xff] %v1582_v1  ;;  %v1154_v3 = vpop.f32.mrb[0].mxu0  ;;  %v1166_v4 = vpop.f32.mrb[0].mxu1 }
  0xdf   :  { %v169_v5 = vadd.f32 %v1154_v3, %v54_v19  ;;  %v413_v6 = vadd.f32 %v1166_v4, %v311_v38  ;;  %v160_v7 = vpop.f32.mrb[1].mxu0  ;;  %v404_v8 = vpop.f32.mrb[1].mxu1 }
  0xe0   :  { %v161_v9 = vadd.f32 %v160_v7, %v44_v20  ;;  %v405_v10 = vadd.f32 %v404_v8, %v301_v36  ;;  %v1155_v15 = vpop.f32.mrb[2].mxu0  ;;  %v1167_v16 = vpop.f32.mrb[2].mxu1 }
  0xe1   :  { %v1586_v11 = vpop.permute.xlu1 %808  ;;  %v1588_v12 = vpop.permute.xlu0 %713  ;;  %v193_v13 = vmax.f32 %v169_v5, 0.0  ;;  %v437_v14 = vmax.f32 %v413_v6, 0.0  ;;  %v172_v55 = vadd.f32 %v1155_v15, %v1510_v21  ;;  %v416_v58 = vadd.f32 %v1167_v16, %v316_v37 }
  0xe2   :  { %v191_v17 = vmax.f32 %v161_v9, 0.0  ;;  %v435_v18 = vmax.f32 %v405_v10, 0.0  ;;  %v163_v19 = vpop.f32.mrb[3].mxu0  ;;  %v407_v38 = vpop.f32.mrb[3].mxu1 }
  0xe3   :  { %v249_v3 = vmul.f32 %v220_v30, %v193_v13  ;;  %v494_v4 = vmul.f32 %v465_v46, %v437_v14  ;;  %v164_v20 = vadd.f32 %v163_v19, %v1512_v22  ;;  %v408_v36 = vadd.f32 %v407_v38, %v306_v35 }
  0xe4   :  { %v247_v7 = vmul.f32 %v1524_v28, %v191_v17  ;;  %v492_v8 = vmul.f32 %v455_v44, %v435_v18  ;;  %v194_v1 = vmax.f32 %v172_v55, 0.0  ;;  %v438_v9 = vmax.f32 %v416_v58, 0.0 }
  0xe5   :  { %v1593_v5 = vpop.permute.xlu1 %718  ;;  %v1595_v6 = vpop.permute.xlu0 %952  ;;  %v192_v10 = vmax.f32 %v164_v20, 0.0  ;;  %v436_v62 = vmax.f32 %v408_v36, 0.0  ;;  %v259_v21 = vsel %vm255_vm1, %v249_v3, 0.0  ;;  %v503_v37 = vsel %vm255_vm1, %v494_v4, 0.0 }
  0xe6   :  { %v1158_v30 = vpop.f32.mrb[4].mxu0  ;;  %v1170_v46 = vpop.f32.mrb[4].mxu1  ;;  %v256_v55 = vsel %vm255_vm1, %v247_v7, 0.0  ;;  %v500_v58 = vsel %vm255_vm1, %v492_v8, 0.0 }
  0xe7   :  { %v248_v22 = vmul.f32 %v1522_v27, %v192_v10  ;;  %v493_v35 = vmul.f32 %v460_v43, %v436_v62  ;;  %v185_v28 = vadd.f32 %v1158_v30, %v1520_v26  ;;  %v429_v44 = vadd.f32 %v1170_v46, %v1542_v42  ;;  %v176_v13 = vpop.f32.mrb[5].mxu0  ;;  %v420_v14 = vpop.f32.mrb[5].mxu1 }
  0xe8   :  { %v177_v15 = vadd.f32 %v176_v13, %v1516_v24  ;;  %v421_v16 = vadd.f32 %v420_v14, %v1538_v40  ;;  %v250_v27 = vmul.f32 %v1526_v29, %v194_v1  ;;  %v495_v26 = vmul.f32 %v1544_v45, %v438_v9  ;;  %v1159_v62 = vpop.f32.mrb[6].mxu0  ;;  %v1171_v19 = vpop.f32.mrb[6].mxu1 }
  0xe9   :  { %v1606_v17 = vpop.permute.xlu1 %957  ;;  %v1608_v18 = vpop.permute.xlu0 %813  ;;  %v257_v42 = vsel %vm255_vm1, %v248_v22, 0.0  ;;  %v501_v43 = vsel %vm255_vm1, %v493_v35, 0.0  ;;  %v197_v36 = vmax.f32 %v185_v28, 0.0  ;;  %v441_v7 = vmax.f32 %v429_v44, 0.0 }
  0xea   :  { %v258_v38 = vadd.f32 %v257_v42, %v256_v55  ;;  %v502_v3 = vadd.f32 %v501_v43, %v500_v58  ;;  %v195_v4 = vmax.f32 %v177_v15, 0.0  ;;  %v439_v24 = vmax.f32 %v421_v16, 0.0  ;;  %v179_v20 = vpop.f32.mrb[7].mxu0  ;;  %v423_v40 = vpop.f32.mrb[7].mxu1 }
  0xeb   :  { %v188_v8 = vadd.f32 %v1159_v62, %v1518_v25  ;;  %v432_v29 = vadd.f32 %v1171_v19, %v1540_v41  ;;  %v261_v46 = vsel %vm255_vm1, %v250_v27, 0.0  ;;  %v505_v22 = vsel %vm255_vm1, %v495_v26, 0.0 }
  0xec   :  { %v260_v1 = vadd.f32 %v259_v21, %v258_v38  ;;  %v504_v45 = vadd.f32 %v503_v37, %v502_v3  ;;  %v251_v9 = vmul.f32 %v1530_v32, %v195_v4  ;;  %v496_v10 = vmul.f32 %v1548_v48, %v439_v24 }
  0xed   :  { %v1618_v30 = vpop.permute.xlu0 %579  ;;  %v198_v35 = vmax.f32 %v188_v8, 0.0  ;;  %v442_v13 = vmax.f32 %v432_v29, 0.0  ;;  %v1622_v28 = vpop.permute.xlu1 %723  ;;  %v253_v48 = vmul.f32 %v1534_v34, %v197_v36  ;;  %v498_v14 = vmul.f32 %v1552_v50, %v441_v7 }
  0xee   :  { %v262_v44 = vadd.f32 %v261_v46, %v260_v1  ;;  %v263_v25 = vsel %vm255_vm1, %v251_v9, 0.0  ;;  %v506_v41 = vadd.f32 %v505_v22, %v504_v45  ;;  %v507_v21 = vsel %vm255_vm1, %v496_v10, 0.0  ;;  %v1178_v37 = vpop.f32.mrb[8].mxu0  ;;  %v1190_v32 = vpop.f32.mrb[8].mxu1 }
  0xef   :  { %v180_v55 = vadd.f32 %v179_v20, %v1514_v23  ;;  %v424_v58 = vadd.f32 %v423_v40, %v1536_v39  ;;  %v648_v15 = vpop.f32.mrb[9].mxu0  ;;  %v892_v16 = vpop.f32.mrb[9].mxu1  ;;  %v657_v42 = vadd.f32 %v1178_v37, %v1560_v54  ;;  %v901_v43 = vadd.f32 %v1190_v32, %v1574_v61 }
  0xf0   :  { %v264_v27 = vadd.f32 %v263_v25, %v262_v44  ;;  %v508_v26 = vadd.f32 %v507_v21, %v506_v41  ;;  %v254_v19 = vmul.f32 %v1532_v33, %v198_v35  ;;  %v499_v34 = vmul.f32 %v1550_v49, %v442_v13  ;;  %v1179_v3 = vpop.f32.mrb[10].mxu0  ;;  %v1191_v23 = vpop.f32.mrb[10].mxu1 }
  0xf1   :  { %v1632_v62 = vpop.permute.xlu0 %818  ;;  %v196_v38 = vmax.f32 %v180_v55, 0.0  ;;  %v440_v50 = vmax.f32 %v424_v58, 0.0  ;;  %v681_v4 = vmax.f32 %v657_v42, 0.0  ;;  %v925_v39 = vmax.f32 %v901_v43, 0.0  ;;  %v651_v40 = vpop.f32.mrb[11].mxu0 }
  0xf2   :  { %v649_v24 = vadd.f32 %v648_v15, %v1556_v52  ;;  %v893_v20 = vadd.f32 %v892_v16, %v1566_v57  ;;  %v895_v54 = vpop.f32.mrb[11].mxu1  ;;  %v660_v33 = vadd.f32 %v1179_v3, %v1558_v53  ;;  %v904_v49 = vadd.f32 %v1191_v23, %v1578_v63  ;;  %v963_v45 = vpop.permute.xlu1 %962 }
  0xf3   :  { %v252_v61 = vmul.f32 %v1528_v31, %v196_v38  ;;  %v497_v36 = vmul.f32 %v1546_v47, %v440_v50  ;;  %v738_v7 = vmul.f32 %v1580_v0, %v681_v4  ;;  %v982_v8 = vmul.f32 %v1595_v6, %v925_v39  ;;  %v1712_v4 = vld [vmem:[#allocation5_spill] sm:$0xff] }
  0xf4   :  { %v679_v29 = vmax.f32 %v649_v24, 0.0  ;;  %v923_v1 = vmax.f32 %v893_v20, 0.0  ;;  %v682_v9 = vmax.f32 %v660_v33, 0.0  ;;  %v926_v10 = vmax.f32 %v904_v49, 0.0  ;;  %v1713_v20 = vld [vmem:[#allocation3_spill] sm:$0xff] }
  0xf5   :  { %v265_v52 = vsel %vm255_vm1, %v252_v61, 0.0  ;;  %v509_v57 = vsel %vm255_vm1, %v497_v36, 0.0  ;;  %v267_v31 = vsel %vm255_vm1, %v253_v48, 0.0  ;;  %v511_v47 = vsel %vm255_vm1, %v498_v14, 0.0  ;;  %v1654_v48 = vpop.permute.xlu0 %728 }
  0xf6   :  { %v266_v53 = vadd.f32 %v265_v52, %v264_v27  ;;  %v510_v46 = vadd.f32 %v509_v57, %v508_v26  ;;  %v1182_v63 = vpop.f32.mrb[12].mxu0  ;;  %v1194_v22 = vpop.f32.mrb[12].mxu1  ;;  %v269_v0 = vsel %vm255_vm1, %v254_v19, 0.0  ;;  %v513_v6 = vsel %vm255_vm1, %v499_v34, 0.0 }
  0xf7   :  { %v736_v35 = vmul.f32 %v1570_v59, %v679_v29  ;;  %v980_v13 = vmul.f32 %v1584_v2, %v923_v1  ;;  %v664_v44 = vpop.f32.mrb[13].mxu0  ;;  %v908_v25 = vpop.f32.mrb[13].mxu1  ;;  %v652_v37 = vadd.f32 %v651_v40, %v1554_v51  ;;  %v896_v32 = vadd.f32 %v895_v54, %v1572_v60 }
  0xf8   :  { %v268_v41 = vadd.f32 %v267_v31, %v266_v53  ;;  %v512_v21 = vadd.f32 %v511_v47, %v510_v46  ;;  %v747_v14 = vsel %vm255_vm1, %v738_v7, 0.0  ;;  %v991_v55 = vsel %vm255_vm1, %v982_v8, 0.0  ;;  %v1183_v15 = vpop.f32.mrb[14].mxu0  ;;  %v1195_v2 = vpop.f32.mrb[14].mxu1 }
  0xf9   :  { %v739_v58 = vmul.f32 %v1588_v12, %v682_v9  ;;  %v983_v59 = vmul.f32 %v1606_v17, %v926_v10  ;;  %v680_v26 = vmax.f32 %v652_v37, 0.0  ;;  %v924_v42 = vmax.f32 %v896_v32, 0.0  ;;  %v667_v43 = vpop.f32.mrb[15].mxu0  ;;  %v911_v51 = vpop.f32.mrb[15].mxu1  ;;  %v1711_v17 = vld [vmem:[#allocation4_spill] sm:$0xff] }
  0xfa   :  { %v270_v16 = vadd.f32 %v269_v0, %v268_v41  ;;  %v514_v27 = vadd.f32 %v513_v6, %v512_v21  ;;  %v744_v60 = vsel %vm255_vm1, %v736_v35, 0.0  ;;  %v988_v19 = vsel %vm255_vm1, %v980_v13, 0.0  ;;  %v824_v34 = vpop.permute.xlu1 %823  ;;  %v968_v1 = vpop.permute.xlu0 %967  ;;  %v1714_v41 = vld [vmem:[#allocation2_spill] sm:$0xff] }
  0xfb   :  { %v665_v38 = vadd.f32 %v664_v44, %v1564_v56  ;;  %v909_v50 = vadd.f32 %v908_v25, %v1586_v11  ;;  %v737_v23 = vmul.f32 %v1711_v17, %v680_v26  ;;  %v981_v39 = vmul.f32 %v1712_v4, %v924_v42  ;;  %v521_v32 = vld [vmem:[%s1705_s4 + $0x1] sm:$0x1] }
  0xfc   :  { %v271_v12 = vrot.slane %v270_v16, 4  ;;  %v515_v3 = vrot.slane %v514_v27, 4  ;;  %v749_v24 = vsel %vm255_vm1, %v739_v58, 0.0  ;;  %v673_v40 = vadd.f32 %v1182_v63, %v1713_v20 }
  0xfd   :  { %v683_v54 = vmax.f32 %v665_v38, 0.0  ;;  %v927_v61 = vmax.f32 %v909_v50, 0.0  ;;  %v745_v49 = vsel %vm255_vm1, %v737_v23, 0.0  ;;  %v989_v56 = vsel %vm255_vm1, %v981_v39, 0.0 }
  0xfe   :  { %v272_v36 = vadd.f32 %v271_v12, %v270_v16  ;;  %v516_v33 = vadd.f32 %v515_v3, %v514_v27  ;;  %v993_v11 = vsel %vm255_vm1, %v983_v59, 0.0  ;;  %v746_v7 = vadd.f32 %v745_v49, %v744_v60  ;;  %v734_v46 = vpop.permute.xlu1 %733 }
  0xff   :  { %v990_v8 = vadd.f32 %v989_v56, %v988_v19  ;;  %v740_v29 = vmul.f32 %v1593_v5, %v683_v54  ;;  %v917_v9 = vadd.f32 %v1194_v22, %v1632_v62  ;;  %v984_v10 = vmul.f32 %v963_v45, %v927_v61 }
 0x100   :  { %v273_v52 = vrot.slane %v272_v36, 2  ;;  %v517_v57 = vrot.slane %v516_v33, 2  ;;  %v748_v31 = vadd.f32 %v747_v14, %v746_v7  ;;  %v685_v53 = vmax.f32 %v673_v40, 0.0 }
 0x101   :  { %v992_v47 = vadd.f32 %v991_v55, %v990_v8  ;;  %v676_v63 = vadd.f32 %v1183_v15, %v1618_v30  ;;  %v751_v35 = vsel %vm255_vm1, %v740_v29, 0.0  ;;  %v995_v13 = vsel %vm255_vm1, %v984_v10, 0.0  ;;  %v277_v30 = vld [vmem:[%s1705_s4] sm:$0x1]  ;;  %v973_v15 = vpop.permute.xlu0 %972  ;;  %v1009_v10 = vld [vmem:[%s1705_s4 + $0x3] sm:$0x1] }
 0x102   :  { %v274_v0 = vadd.f32 %v273_v52, %v272_v36  ;;  %v518_v6 = vadd.f32 %v517_v57, %v516_v33  ;;  %v750_v44 = vadd.f32 %v749_v24, %v748_v31  ;;  %v920_v25 = vadd.f32 %v1195_v2, %v824_v34  ;;  %v765_v52 = vld [vmem:[%s1705_s4 + $0x2] sm:$0x1] }
 0x103   :  { %v994_v5 = vadd.f32 %v993_v11, %v992_v47  ;;  %v668_v21 = vadd.f32 %v667_v43, %v1714_v41  ;;  %v929_v45 = vmax.f32 %v917_v9, 0.0  ;;  %v912_v22 = vadd.f32 %v911_v51, %v1608_v18  ;;  %v978_v43 = vpop.permute.xlu1 %977 }
 0x104   :  { %v275_v37 = vrot.slane %v274_v0, 1  ;;  %v519_v62 = vrot.slane %v518_v6, 1  ;;  %v752_v14 = vadd.f32 %v751_v35, %v750_v44  ;;  %v686_v58 = vmax.f32 %v676_v63, 0.0 }
 0x105   :  { %v996_v55 = vadd.f32 %v995_v13, %v994_v5  ;;  %v684_v59 = vmax.f32 %v668_v21, 0.0  ;;  %v930_v27 = vmax.f32 %v920_v25, 0.0  ;;  %v928_v26 = vmax.f32 %v912_v22, 0.0 }
 0x106   :  { %v276_v2 = vadd.f32 %v275_v37, %v274_v0  ;;  %v520_v16 = vadd.f32 %v519_v62, %v518_v6  ;;  %v742_v42 = vmul.f32 %v1654_v48, %v685_v53  ;;  %v986_v34 = vmul.f32 %v973_v15, %v929_v45 }
 0x107   :  { %v741_v18 = vmul.f32 %v1622_v28, %v684_v59  ;;  %v985_v19 = vmul.f32 %v968_v1, %v928_v26  ;;  %v743_v38 = vmul.f32 %v734_v46, %v686_v58  ;;  %v987_v17 = vmul.f32 %v978_v43, %v930_v27 }
 0x108   :  { %v278_v51 = vmul.f32 %v277_v30, %v276_v2  ;;  %v522_v60 = vmul.f32 %v521_v32, %v520_v16  ;;  %v755_v4 = vsel %vm255_vm1, %v742_v42, 0.0  ;;  %v999_v48 = vsel %vm255_vm1, %v986_v34, 0.0 }
 0x109   :  { %v753_v50 = vsel %vm255_vm1, %v741_v18, 0.0  ;;  %v997_v3 = vsel %vm255_vm1, %v985_v19, 0.0  ;;  %v757_v28 = vsel %vm255_vm1, %v743_v38, 0.0  ;;  %v1001_v54 = vsel %vm255_vm1, %v987_v17, 0.0 }
 0x10a   :  { %v754_v12 = vadd.f32 %v753_v50, %v752_v14  ;;  %v523_v23 = vadd.f32 %v522_v60, %v278_v51  ;;  %v998_v39 = vadd.f32 %v997_v3, %v996_v55 }
 0x10c   :  { %v756_v24 = vadd.f32 %v755_v4, %v754_v12  ;;  %v1000_v20 = vadd.f32 %v999_v48, %v998_v39 }
 0x10e   :  { %v758_v40 = vadd.f32 %v757_v28, %v756_v24  ;;  %v1002_v61 = vadd.f32 %v1001_v54, %v1000_v20 }
 0x110   :  { %v759_v36 = vrot.slane %v758_v40, 4  ;;  %v1003_v33 = vrot.slane %v1002_v61, 4 }
 0x112   :  { %v760_v49 = vadd.f32 %v759_v36, %v758_v40  ;;  %v1004_v56 = vadd.f32 %v1003_v33, %v1002_v61 }
 0x114   :  { %v761_v11 = vrot.slane %v760_v49, 2  ;;  %v1005_v7 = vrot.slane %v1004_v56, 2 }
 0x116   :  { %v762_v8 = vadd.f32 %v761_v11, %v760_v49  ;;  %v1006_v29 = vadd.f32 %v1005_v7, %v1004_v56 }
 0x118   :  { %v763_v1 = vrot.slane %v762_v8, 1  ;;  %v1007_v57 = vrot.slane %v1006_v29, 1 }
 0x11a   :  { %v764_v9 = vadd.f32 %v763_v1, %v762_v8  ;;  %v1008_v31 = vadd.f32 %v1007_v57, %v1006_v29 }
 0x11c   :  { %v766_v47 = vmul.f32 %v765_v52, %v764_v9  ;;  %v1010_v46 = vmul.f32 %v1009_v10, %v1008_v31 }
 0x11e   :  { %v767_v53 = vadd.f32 %v766_v47, %v523_v23 }
 0x120   :  { %v1011_v63 = vadd.f32 %v1010_v46, %v767_v53 }
 0x122   :  { %1013 = vst.msk [vmem:[%s1706_s5] sm:$0x1] %vm1012_vm2, %v1011_v63 }

</bundles_post_ra>
